<compile_context>
chip_gen: v5e
topology: v5e:2x2
jax: 0.10.0
libtpu: 0.0.40
codegen_flags: <defaults>
</compile_context>

<pallas_src>
import math
import jax
import jax.numpy as jnp
from jax.experimental import pallas as pl
from jax.experimental.pallas import tpu as pltpu

D_MODEL = 8
N_HEAD = 2
N_HID = 8
HEAD_DIM = D_MODEL // N_HEAD
LN_EPS = 1e-5

PARAM_ORDER = [
    "ln_w", "ln_b",
    "sa_in_w", "sa_in_b", "sa_out_w", "sa_out_b",
    "ca_in_w", "ca_in_b", "ca_out_w", "ca_out_b",
    "l1_w", "l1_b", "l2_w", "l2_b",
]


# ---------------------------------------------------------------------------
# In-kernel math helpers (2-D per-batch tiles)
# ---------------------------------------------------------------------------
def _ln(x, w, b):
    # x: (N, E); w, b: (1, E)
    mu = jnp.mean(x, axis=-1, keepdims=True)
    var = jnp.mean((x - mu) ** 2, axis=-1, keepdims=True)
    return (x - mu) * jax.lax.rsqrt(var + LN_EPS) * w + b


def _mha(q, k, v):
    """Multi-head attention for a single batch element (no mask needed).

    q: (Tq, E), k/v: (Tk, E).  The 1/sqrt(head_dim) scale is already folded into the
    q projection weights, so scores are a plain batched contraction + softmax.
    """
    qh = jnp.stack([q[:, h * HEAD_DIM:(h + 1) * HEAD_DIM] for h in range(N_HEAD)], axis=0)
    kh = jnp.stack([k[:, h * HEAD_DIM:(h + 1) * HEAD_DIM] for h in range(N_HEAD)], axis=0)
    vh = jnp.stack([v[:, h * HEAD_DIM:(h + 1) * HEAD_DIM] for h in range(N_HEAD)], axis=0)

    s = jnp.einsum("hqd,hkd->hqk", qh, kh,
                   preferred_element_type=jnp.float32)           # (H, Tq, Tk)
    s = s - jnp.max(s, axis=-1, keepdims=True)
    p = jnp.exp(s)
    p = p / jnp.sum(p, axis=-1, keepdims=True)                   # exact divide
    o = jnp.einsum("hqk,hkd->hqd", p, vh,
                   preferred_element_type=jnp.float32)           # (H, Tq, D)
    return jnp.concatenate([o[h] for h in range(N_HEAD)], axis=-1)   # (Tq, E)


# ---------------------------------------------------------------------------
# Pallas kernel: one grid step = one batch element; weights resident across steps
# ---------------------------------------------------------------------------
def decoder_layer_kernel(tgt_ref, mem_ref, w_ref, l2w_ref, vec_ref, out_ref):
    E, F = D_MODEL, N_HID
    x = tgt_ref[...]      # (T, E)   - batch dim squeezed by BlockSpec
    mem = mem_ref[...]    # (S, E)
    W = w_ref[...]        # (E, 8E + F)   packed weight slab
    vec = vec_ref[...]    # (1, 15E + F)  packed LN / bias slab

    def vseg(off, size):
        return vec[:, off:off + size]     # (1, size) -> broadcasts over rows

    # ---- self-attention (Pre-LN): q = k = v = norm1(tgt); scale folded into Wq ----
    x2 = _ln(x, vseg(0, E), vseg(3 * E, E))                       # norm1
    qkv = jnp.dot(x2, W[:, 0:3 * E],
                  preferred_element_type=jnp.float32) + vseg(6 * E, 3 * E)
    sa = _mha(qkv[:, 0:E], qkv[:, E:2 * E], qkv[:, 2 * E:3 * E])
    sa = jnp.dot(sa, W[:, 3 * E:4 * E],
                 preferred_element_type=jnp.float32) + vseg(9 * E, E)
    x = x + sa

    # ---- cross-attention: q = norm2(tgt); k = v = memory (pos_encoder is None) ----
    x2 = _ln(x, vseg(E, E), vseg(4 * E, E))                       # norm2
    q = jnp.dot(x2, W[:, 4 * E:5 * E],
                preferred_element_type=jnp.float32) + vseg(10 * E, E)
    kv = jnp.dot(mem, W[:, 5 * E:7 * E],
                 preferred_element_type=jnp.float32) + vseg(11 * E, 2 * E)
    ca = _mha(q, kv[:, 0:E], kv[:, E:2 * E])
    ca = jnp.dot(ca, W[:, 7 * E:8 * E],
                 preferred_element_type=jnp.float32) + vseg(13 * E, E)
    x = x + ca

    # ---- feed-forward: linear2(relu(linear1(norm3(tgt)))) ----
    x2 = _ln(x, vseg(2 * E, E), vseg(5 * E, E))                   # norm3
    h = jnp.maximum(
        jnp.dot(x2, W[:, 8 * E:8 * E + F],
                preferred_element_type=jnp.float32) + vseg(14 * E, F),
        0.0)
    ff = jnp.dot(h, l2w_ref[...],
                 preferred_element_type=jnp.float32) + vseg(14 * E + F, E)
    out_ref[...] = x + ff


# ---------------------------------------------------------------------------
# Wrapper: trace-time weight packing + per-batch grid pallas_call
# ---------------------------------------------------------------------------
def transformer_decoder_layer(tgt_tbe, mem_sbe, params):
    """tgt_tbe: (tlen, batch, d_model), mem_sbe: (slen, batch, d_model) — PyTorch layout."""
    T, B, E = tgt_tbe.shape
    S = mem_sbe.shape[0]
    F = N_HID
    scale = 1.0 / math.sqrt(HEAD_DIM)

    # Single batch-major transpose so grid=(B,) blocks are contiguous per batch element.
    tgt_bte = jnp.transpose(tgt_tbe, (1, 0, 2))   # (B, T, E)
    mem_bse = jnp.transpose(mem_sbe, (1, 0, 2))   # (B, S, E)

    # --- packed weight slab (all K=E dots), 1/sqrt(head_dim) folded into q columns ---
    wq = params["sa_in_w"][:E, :].T * scale        # (E, E)
    wk = params["sa_in_w"][E:2 * E, :].T
    wv = params["sa_in_w"][2 * E:, :].T
    sa_qkv_w = jnp.concatenate([wq, wk, wv], axis=1)       # (E, 3E)
    sa_out_w = params["sa_out_w"].T                        # (E, E)
    ca_q_w = params["ca_in_w"][:E, :].T * scale            # (E, E)
    ca_kv_w = params["ca_in_w"][E:, :].T                   # (E, 2E)
    ca_out_w = params["ca_out_w"].T                        # (E, E)
    l1_w = params["l1_w"].T                                # (E, F)
    w_slab = jnp.concatenate(
        [sa_qkv_w, sa_out_w, ca_q_w, ca_kv_w, ca_out_w, l1_w], axis=1)   # (E, 8E+F)
    l2_w = params["l2_w"].T                                # (F, E)

    # --- packed LN / bias slab: (1, 15E + F) ---
    sa_b = params["sa_in_b"][0]
    sa_qkv_b = jnp.concatenate([sa_b[:E] * scale, sa_b[E:]])
    ca_q_b = params["ca_in_b"][0, :E] * scale
    ca_kv_b = params["ca_in_b"][0, E:]
    vec = jnp.concatenate([
        params["ln_w"].reshape(-1),     # 3E : ln1_w | ln2_w | ln3_w
        params["ln_b"].reshape(-1),     # 3E
        sa_qkv_b,                       # 3E
        params["sa_out_b"][0],          # E
        ca_q_b,                         # E
        ca_kv_b,                        # 2E
        params["ca_out_b"][0],          # E
        params["l1_b"][0],              # F
        params["l2_b"][0],              # E
    ])[None, :]                         # (1, 15E + F)

    out_bte = pl.pallas_call(
        decoder_layer_kernel,
        out_shape=jax.ShapeDtypeStruct((B, T, E), jnp.float32),
        grid_spec=pltpu.PrefetchScalarGridSpec(
            num_scalar_prefetch=0,
            grid=(B,),
            in_specs=[
                pl.BlockSpec((None, T, E), lambda b: (b, 0, 0)),        # tgt (per batch)
                pl.BlockSpec((None, S, E), lambda b: (b, 0, 0)),        # memory (per batch)
                pl.BlockSpec((E, 8 * E + F), lambda b: (0, 0)),         # weight slab (resident)
                pl.BlockSpec((F, E), lambda b: (0, 0)),                 # linear2 weight
                pl.BlockSpec((1, 15 * E + F), lambda b: (0, 0)),        # LN/bias slab
            ],
            out_specs=pl.BlockSpec((None, T, E), lambda b: (b, 0, 0)),
        ),
        compiler_params=pltpu.CompilerParams(
            dimension_semantics=("parallel",)),      # shard batch across TCs on v7x
    )(tgt_bte, mem_bse, w_slab, l2_w, vec)

    return jnp.transpose(out_bte, (1, 0, 2))        # back to (T, B, E)


# ---------------------------------------------------------------------------
# Pure-JAX reference (per-head / per-batch formulation) for checking
# ---------------------------------------------------------------------------
def _layernorm_ref(x, w, b):
    mu = jnp.mean(x, axis=-1, keepdims=True)
    var = jnp.mean((x - mu) ** 2, axis=-1, keepdims=True)
    return (x - mu) * jax.lax.rsqrt(var + LN_EPS) * w + b


def _mha_ref(q_in, k_in, v_in, in_w, in_b, out_w, out_b):
    E = D_MODEL
    wq, wk, wv = in_w[:E, :], in_w[E:2 * E, :], in_w[2 * E:, :]
    bq, bk, bv = in_b[0, :E], in_b[0, E:2 * E], in_b[0, 2 * E:]
    q = jnp.dot(q_in, wq.T) + bq
    k = jnp.dot(k_in, wk.T) + bk
    v = jnp.dot(v_in, wv.T) + bv
    scale = 1.0 / math.sqrt(HEAD_DIM)
    head_outs = []
    for h in range(N_HEAD):
        sl = slice(h * HEAD_DIM, (h + 1) * HEAD_DIM)
        qh, kh, vh = q[:, sl], k[:, sl], v[:, sl]
        scores = jnp.dot(qh, kh.T) * scale
        scores = scores - jnp.max(scores, axis=-1, keepdims=True)
        p = jnp.exp(scores)
        p = p / jnp.sum(p, axis=-1, keepdims=True)
        head_outs.append(jnp.dot(p, vh))
    o = jnp.concatenate(head_outs, axis=-1)
    return jnp.dot(o, out_w.T) + out_b[0]


def _decoder_layer_body_ref(tgt, mem, ln_w, ln_b,
                            sa_in_w, sa_in_b, sa_out_w, sa_out_b,
                            ca_in_w, ca_in_b, ca_out_w, ca_out_b,
                            l1_w, l1_b, l2_w, l2_b):
    tgt2 = _layernorm_ref(tgt, ln_w[0], ln_b[0])
    tgt = tgt + _mha_ref(tgt2, tgt2, tgt2, sa_in_w, sa_in_b, sa_out_w, sa_out_b)
    tgt2 = _layernorm_ref(tgt, ln_w[1], ln_b[1])
    tgt = tgt + _mha_ref(tgt2, mem, mem, ca_in_w, ca_in_b, ca_out_w, ca_out_b)
    tgt2 = _layernorm_ref(tgt, ln_w[2], ln_b[2])
    h = jnp.maximum(jnp.dot(tgt2, l1_w.T) + l1_b[0], 0.0)
    return tgt + jnp.dot(h, l2_w.T) + l2_b[0]


def reference(tgt_tbe, mem_sbe, params):
    p = [params[k] for k in PARAM_ORDER]
    tgt = jnp.transpose(tgt_tbe, (1, 0, 2))
    mem = jnp.transpose(mem_sbe, (1, 0, 2))
    out = jax.vmap(lambda t, m: _decoder_layer_body_ref(t, m, *p))(tgt, mem)
    return jnp.transpose(out, (1, 0, 2))


# ---------------------------------------------------------------------------
# Deterministic parameter init (shapes follow nn.MultiheadAttention / nn.Linear)
# ---------------------------------------------------------------------------
def init_params(key):
    ks = jax.random.split(key, 12)

    def rnd(k, shape, scale=0.1):
        return jax.random.normal(k, shape, jnp.float32) * scale

    return {
        "ln_w": jnp.ones((3, D_MODEL), jnp.float32),
        "ln_b": jnp.zeros((3, D_MODEL), jnp.float32),
        "sa_in_w": rnd(ks[0], (3 * D_MODEL, D_MODEL)),
        "sa_in_b": rnd(ks[1], (1, 3 * D_MODEL)),
        "sa_out_w": rnd(ks[2], (D_MODEL, D_MODEL)),
        "sa_out_b": rnd(ks[3], (1, D_MODEL)),
        "ca_in_w": rnd(ks[4], (3 * D_MODEL, D_MODEL)),
        "ca_in_b": rnd(ks[5], (1, 3 * D_MODEL)),
        "ca_out_w": rnd(ks[6], (D_MODEL, D_MODEL)),
        "ca_out_b": rnd(ks[7], (1, D_MODEL)),
        "l1_w": rnd(ks[8], (N_HID, D_MODEL)),
        "l1_b": rnd(ks[9], (1, N_HID)),
        "l2_w": rnd(ks[10], (D_MODEL, N_HID)),
        "l2_b": rnd(ks[11], (1, D_MODEL)),
    }


if __name__ == "__main__":
    key = jax.random.PRNGKey(0)
    k_tgt, k_mem, k_par = jax.random.split(key, 3)

    T, S, B = 8, 16, 2                    # tlen, slen, batch
    tgt = jax.random.normal(k_tgt, (T, B, D_MODEL), jnp.float32)
    memory = jax.random.normal(k_mem, (S, B, D_MODEL), jnp.float32)
    params = init_params(k_par)

    # TODO(synk): attn_mask / key_padding_mask / pos_encoder paths are not exercised
    # (all None in this configuration); dropout p=0.0 so dropouts are identities.
    out = transformer_decoder_layer(tgt, memory, params)
    out = jax.block_until_ready(out)

    ref = jax.block_until_ready(reference(tgt, memory, params))
    assert out.shape == (T, B, D_MODEL)
    assert jnp.allclose(out, ref, atol=1e-4, rtol=1e-4), "kernel does not match reference"

    print("KERNEL_OK")
</pallas_src>

<mosaic_0001>
module attributes {stable_mosaic.version = 11 : i64} {
  func.func @decoder_layer_kernel(%arg0: i32, %arg1: memref<1x8x8xf32, #tpu.memory_space<vmem>>, %arg2: memref<1x16x8xf32, #tpu.memory_space<vmem>>, %arg3: memref<8x72xf32, #tpu.memory_space<vmem>>, %arg4: memref<8x8xf32, #tpu.memory_space<vmem>>, %arg5: memref<1x128xf32, #tpu.memory_space<vmem>>, %arg6: memref<1x8x8xf32, #tpu.memory_space<vmem>>) attributes {dimension_semantics = [#tpu.dimension_semantics<parallel>], iteration_bounds = array<i64: 2>, scalar_prefetch = 0 : i64, scratch_operands = 0 : i64, tpu.core_type = #tpu.core_type<tc>, window_params = [{transform_indices = @transform_0, window_bounds = array<i64: 1, 8, 8>}, {transform_indices = @transform_1, window_bounds = array<i64: 1, 16, 8>}, {pipeline_mode = #tpu.pipeline_mode<synchronous>, transform_indices = @transform_2, window_bounds = array<i64: 8, 72>}, {pipeline_mode = #tpu.pipeline_mode<synchronous>, transform_indices = @transform_3, window_bounds = array<i64: 8, 8>}, {pipeline_mode = #tpu.pipeline_mode<synchronous>, transform_indices = @transform_4, window_bounds = array<i64: 1, 128>}, {transform_indices = @transform_5, window_bounds = array<i64: 1, 8, 8>}]} {
    %c0 = arith.constant 0 : index
    %c0_0 = arith.constant 0 : index
    %c0_1 = arith.constant 0 : index
    %0 = vector.load %arg1[%c0, %c0_0, %c0_1] : memref<1x8x8xf32, #tpu.memory_space<vmem>>, vector<1x8x8xf32>
    %1 = vector.shape_cast %0 : vector<1x8x8xf32> to vector<8x8xf32>
    %c0_2 = arith.constant 0 : index
    %c0_3 = arith.constant 0 : index
    %c0_4 = arith.constant 0 : index
    %2 = vector.load %arg2[%c0_2, %c0_3, %c0_4] : memref<1x16x8xf32, #tpu.memory_space<vmem>>, vector<1x16x8xf32>
    %3 = vector.shape_cast %2 : vector<1x16x8xf32> to vector<16x8xf32>
    %c0_5 = arith.constant 0 : index
    %c0_6 = arith.constant 0 : index
    %4 = vector.load %arg3[%c0_5, %c0_6] : memref<8x72xf32, #tpu.memory_space<vmem>>, vector<8x72xf32>
    %c0_7 = arith.constant 0 : index
    %c0_8 = arith.constant 0 : index
    %5 = vector.load %arg5[%c0_7, %c0_8] : memref<1x128xf32, #tpu.memory_space<vmem>>, vector<1x128xf32>
    %6 = vector.extract_strided_slice %5 {offsets = [0, 0], sizes = [1, 8], strides = [1, 1]} : vector<1x128xf32> to vector<1x8xf32>
    %7 = vector.extract_strided_slice %5 {offsets = [0, 24], sizes = [1, 8], strides = [1, 1]} : vector<1x128xf32> to vector<1x8xf32>
    %cst = arith.constant dense<0.000000e+00> : vector<8xf32>
    %8 = vector.multi_reduction <add>, %1, %cst [1] : vector<8x8xf32> to vector<8xf32>
    %9 = vector.shape_cast %8 : vector<8xf32> to vector<8x1xf32>
    %cst_9 = arith.constant 8.000000e+00 : f32
    %10 = vector.broadcast %cst_9 : f32 to vector<8x1xf32>
    %11 = arith.divf %9, %10 : vector<8x1xf32>
    %12 = vector.broadcast %11 : vector<8x1xf32> to vector<8x8xf32>
    %13 = arith.subf %1, %12 : vector<8x8xf32>
    %14 = arith.mulf %13, %13 : vector<8x8xf32>
    %cst_10 = arith.constant dense<0.000000e+00> : vector<8xf32>
    %15 = vector.multi_reduction <add>, %14, %cst_10 [1] : vector<8x8xf32> to vector<8xf32>
    %16 = vector.shape_cast %15 : vector<8xf32> to vector<8x1xf32>
    %cst_11 = arith.constant 8.000000e+00 : f32
    %17 = vector.broadcast %cst_11 : f32 to vector<8x1xf32>
    %18 = arith.divf %16, %17 : vector<8x1xf32>
    %19 = vector.broadcast %11 : vector<8x1xf32> to vector<8x8xf32>
    %20 = arith.subf %1, %19 : vector<8x8xf32>
    %cst_12 = arith.constant 9.99999974E-6 : f32
    %21 = vector.broadcast %cst_12 : f32 to vector<8x1xf32>
    %22 = arith.addf %18, %21 : vector<8x1xf32>
    %23 = math.rsqrt %22 : vector<8x1xf32>
    %24 = vector.broadcast %23 : vector<8x1xf32> to vector<8x8xf32>
    %25 = arith.mulf %20, %24 : vector<8x8xf32>
    %26 = vector.broadcast %6 : vector<1x8xf32> to vector<8x8xf32>
    %27 = arith.mulf %25, %26 : vector<8x8xf32>
    %28 = vector.broadcast %7 : vector<1x8xf32> to vector<8x8xf32>
    %29 = arith.addf %27, %28 : vector<8x8xf32>
    %30 = vector.extract_strided_slice %4 {offsets = [0, 0], sizes = [8, 24], strides = [1, 1]} : vector<8x72xf32> to vector<8x24xf32>
    %cst_13 = arith.constant dense<0.000000e+00> : vector<8x24xf32>
    %31 = tpu.matmul %29, %30, %cst_13 {dimension_numbers = #tpu.dot_dimension_numbers<[1], [0], [0], [1], [0, 0, 1, 1], [], []>} : vector<8x8xf32>, vector<8x24xf32>, vector<8x24xf32> -> vector<8x24xf32>
    %32 = vector.extract_strided_slice %5 {offsets = [0, 48], sizes = [1, 24], strides = [1, 1]} : vector<1x128xf32> to vector<1x24xf32>
    %33 = vector.broadcast %32 : vector<1x24xf32> to vector<8x24xf32>
    %34 = arith.addf %31, %33 : vector<8x24xf32>
    %35 = vector.extract_strided_slice %34 {offsets = [0, 0], sizes = [8, 8], strides = [1, 1]} : vector<8x24xf32> to vector<8x8xf32>
    %36 = vector.extract_strided_slice %34 {offsets = [0, 8], sizes = [8, 8], strides = [1, 1]} : vector<8x24xf32> to vector<8x8xf32>
    %37 = vector.extract_strided_slice %34 {offsets = [0, 16], sizes = [8, 8], strides = [1, 1]} : vector<8x24xf32> to vector<8x8xf32>
    %38 = vector.extract_strided_slice %35 {offsets = [0, 0], sizes = [8, 4], strides = [1, 1]} : vector<8x8xf32> to vector<8x4xf32>
    %39 = vector.extract_strided_slice %35 {offsets = [0, 4], sizes = [8, 4], strides = [1, 1]} : vector<8x8xf32> to vector<8x4xf32>
    %40 = vector.shape_cast %38 : vector<8x4xf32> to vector<1x8x4xf32>
    %41 = vector.shape_cast %39 : vector<8x4xf32> to vector<1x8x4xf32>
    %42 = tpu.concatenate %40, %41 in 0 : vector<1x8x4xf32>, vector<1x8x4xf32> -> vector<2x8x4xf32>
    %43 = vector.extract_strided_slice %36 {offsets = [0, 0], sizes = [8, 4], strides = [1, 1]} : vector<8x8xf32> to vector<8x4xf32>
    %44 = vector.extract_strided_slice %36 {offsets = [0, 4], sizes = [8, 4], strides = [1, 1]} : vector<8x8xf32> to vector<8x4xf32>
    %45 = vector.shape_cast %43 : vector<8x4xf32> to vector<1x8x4xf32>
    %46 = vector.shape_cast %44 : vector<8x4xf32> to vector<1x8x4xf32>
    %47 = tpu.concatenate %45, %46 in 0 : vector<1x8x4xf32>, vector<1x8x4xf32> -> vector<2x8x4xf32>
    %48 = vector.extract_strided_slice %37 {offsets = [0, 0], sizes = [8, 4], strides = [1, 1]} : vector<8x8xf32> to vector<8x4xf32>
    %49 = vector.extract_strided_slice %37 {offsets = [0, 4], sizes = [8, 4], strides = [1, 1]} : vector<8x8xf32> to vector<8x4xf32>
    %50 = vector.shape_cast %48 : vector<8x4xf32> to vector<1x8x4xf32>
    %51 = vector.shape_cast %49 : vector<8x4xf32> to vector<1x8x4xf32>
    %52 = tpu.concatenate %50, %51 in 0 : vector<1x8x4xf32>, vector<1x8x4xf32> -> vector<2x8x4xf32>
    "tpu.trace_start"() <{level = 10 : i32, message = "hqd,hkd->hqk"}> : () -> ()
    %cst_14 = arith.constant dense<0.000000e+00> : vector<2x8x8xf32>
    %53 = tpu.matmul %42, %47, %cst_14 {dimension_numbers = #tpu.dot_dimension_numbers<[2], [2], [1], [1], [0, 0, 0, 1, 1, 1], [0], [0]>} : vector<2x8x4xf32>, vector<2x8x4xf32>, vector<2x8x8xf32> -> vector<2x8x8xf32>
    "tpu.trace_stop"() : () -> ()
    %cst_15 = arith.constant dense<0xFF800000> : vector<2x8xf32>
    %54 = vector.multi_reduction <maximumf>, %53, %cst_15 [2] : vector<2x8x8xf32> to vector<2x8xf32>
    %55 = vector.shape_cast %54 : vector<2x8xf32> to vector<2x8x1xf32>
    %56 = vector.broadcast %55 : vector<2x8x1xf32> to vector<2x8x8xf32>
    %57 = arith.subf %53, %56 : vector<2x8x8xf32>
    %58 = math.exp %57 : vector<2x8x8xf32>
    %cst_16 = arith.constant dense<0.000000e+00> : vector<2x8xf32>
    %59 = vector.multi_reduction <add>, %58, %cst_16 [2] : vector<2x8x8xf32> to vector<2x8xf32>
    %60 = vector.shape_cast %59 : vector<2x8xf32> to vector<2x8x1xf32>
    %61 = vector.broadcast %60 : vector<2x8x1xf32> to vector<2x8x8xf32>
    %62 = arith.divf %58, %61 : vector<2x8x8xf32>
    "tpu.trace_start"() <{level = 10 : i32, message = "hqk,hkd->hqd"}> : () -> ()
    %cst_17 = arith.constant dense<0.000000e+00> : vector<2x8x4xf32>
    %63 = tpu.matmul %62, %52, %cst_17 {dimension_numbers = #tpu.dot_dimension_numbers<[2], [1], [1], [2], [0, 0, 0, 1, 1, 2], [0], [0]>} : vector<2x8x8xf32>, vector<2x8x4xf32>, vector<2x8x4xf32> -> vector<2x8x4xf32>
    "tpu.trace_stop"() : () -> ()
    %64 = vector.extract_strided_slice %63 {offsets = [0, 0, 0], sizes = [1, 8, 4], strides = [1, 1, 1]} : vector<2x8x4xf32> to vector<1x8x4xf32>
    %65 = vector.shape_cast %64 : vector<1x8x4xf32> to vector<8x4xf32>
    %66 = vector.extract_strided_slice %63 {offsets = [1, 0, 0], sizes = [1, 8, 4], strides = [1, 1, 1]} : vector<2x8x4xf32> to vector<1x8x4xf32>
    %67 = vector.shape_cast %66 : vector<1x8x4xf32> to vector<8x4xf32>
    %68 = tpu.concatenate %65, %67 in 1 : vector<8x4xf32>, vector<8x4xf32> -> vector<8x8xf32>
    %69 = vector.extract_strided_slice %4 {offsets = [0, 24], sizes = [8, 8], strides = [1, 1]} : vector<8x72xf32> to vector<8x8xf32>
    %cst_18 = arith.constant dense<0.000000e+00> : vector<8x8xf32>
    %70 = tpu.matmul %68, %69, %cst_18 {dimension_numbers = #tpu.dot_dimension_numbers<[1], [0], [0], [1], [0, 0, 1, 1], [], []>} : vector<8x8xf32>, vector<8x8xf32>, vector<8x8xf32> -> vector<8x8xf32>
    %71 = vector.extract_strided_slice %5 {offsets = [0, 72], sizes = [1, 8], strides = [1, 1]} : vector<1x128xf32> to vector<1x8xf32>
    %72 = vector.broadcast %71 : vector<1x8xf32> to vector<8x8xf32>
    %73 = arith.addf %70, %72 : vector<8x8xf32>
    %74 = arith.addf %1, %73 : vector<8x8xf32>
    %75 = vector.extract_strided_slice %5 {offsets = [0, 8], sizes = [1, 8], strides = [1, 1]} : vector<1x128xf32> to vector<1x8xf32>
    %76 = vector.extract_strided_slice %5 {offsets = [0, 32], sizes = [1, 8], strides = [1, 1]} : vector<1x128xf32> to vector<1x8xf32>
    %cst_19 = arith.constant dense<0.000000e+00> : vector<8xf32>
    %77 = vector.multi_reduction <add>, %74, %cst_19 [1] : vector<8x8xf32> to vector<8xf32>
    %78 = vector.shape_cast %77 : vector<8xf32> to vector<8x1xf32>
    %cst_20 = arith.constant 8.000000e+00 : f32
    %79 = vector.broadcast %cst_20 : f32 to vector<8x1xf32>
    %80 = arith.divf %78, %79 : vector<8x1xf32>
    %81 = vector.broadcast %80 : vector<8x1xf32> to vector<8x8xf32>
    %82 = arith.subf %74, %81 : vector<8x8xf32>
    %83 = arith.mulf %82, %82 : vector<8x8xf32>
    %cst_21 = arith.constant dense<0.000000e+00> : vector<8xf32>
    %84 = vector.multi_reduction <add>, %83, %cst_21 [1] : vector<8x8xf32> to vector<8xf32>
    %85 = vector.shape_cast %84 : vector<8xf32> to vector<8x1xf32>
    %cst_22 = arith.constant 8.000000e+00 : f32
    %86 = vector.broadcast %cst_22 : f32 to vector<8x1xf32>
    %87 = arith.divf %85, %86 : vector<8x1xf32>
    %88 = vector.broadcast %80 : vector<8x1xf32> to vector<8x8xf32>
    %89 = arith.subf %74, %88 : vector<8x8xf32>
    %cst_23 = arith.constant 9.99999974E-6 : f32
    %90 = vector.broadcast %cst_23 : f32 to vector<8x1xf32>
    %91 = arith.addf %87, %90 : vector<8x1xf32>
    %92 = math.rsqrt %91 : vector<8x1xf32>
    %93 = vector.broadcast %92 : vector<8x1xf32> to vector<8x8xf32>
    %94 = arith.mulf %89, %93 : vector<8x8xf32>
    %95 = vector.broadcast %75 : vector<1x8xf32> to vector<8x8xf32>
    %96 = arith.mulf %94, %95 : vector<8x8xf32>
    %97 = vector.broadcast %76 : vector<1x8xf32> to vector<8x8xf32>
    %98 = arith.addf %96, %97 : vector<8x8xf32>
    %99 = vector.extract_strided_slice %4 {offsets = [0, 32], sizes = [8, 8], strides = [1, 1]} : vector<8x72xf32> to vector<8x8xf32>
    %cst_24 = arith.constant dense<0.000000e+00> : vector<8x8xf32>
    %100 = tpu.matmul %98, %99, %cst_24 {dimension_numbers = #tpu.dot_dimension_numbers<[1], [0], [0], [1], [0, 0, 1, 1], [], []>} : vector<8x8xf32>, vector<8x8xf32>, vector<8x8xf32> -> vector<8x8xf32>
    %101 = vector.extract_strided_slice %5 {offsets = [0, 80], sizes = [1, 8], strides = [1, 1]} : vector<1x128xf32> to vector<1x8xf32>
    %102 = vector.broadcast %101 : vector<1x8xf32> to vector<8x8xf32>
    %103 = arith.addf %100, %102 : vector<8x8xf32>
    %104 = vector.extract_strided_slice %4 {offsets = [0, 40], sizes = [8, 16], strides = [1, 1]} : vector<8x72xf32> to vector<8x16xf32>
    %cst_25 = arith.constant dense<0.000000e+00> : vector<16x16xf32>
    %105 = tpu.matmul %3, %104, %cst_25 {dimension_numbers = #tpu.dot_dimension_numbers<[1], [0], [0], [1], [0, 0, 1, 1], [], []>} : vector<16x8xf32>, vector<8x16xf32>, vector<16x16xf32> -> vector<16x16xf32>
    %106 = vector.extract_strided_slice %5 {offsets = [0, 88], sizes = [1, 16], strides = [1, 1]} : vector<1x128xf32> to vector<1x16xf32>
    %107 = vector.broadcast %106 : vector<1x16xf32> to vector<16x16xf32>
    %108 = arith.addf %105, %107 : vector<16x16xf32>
    %109 = vector.extract_strided_slice %108 {offsets = [0, 0], sizes = [16, 8], strides = [1, 1]} : vector<16x16xf32> to vector<16x8xf32>
    %110 = vector.extract_strided_slice %108 {offsets = [0, 8], sizes = [16, 8], strides = [1, 1]} : vector<16x16xf32> to vector<16x8xf32>
    %111 = vector.extract_strided_slice %103 {offsets = [0, 0], sizes = [8, 4], strides = [1, 1]} : vector<8x8xf32> to vector<8x4xf32>
    %112 = vector.extract_strided_slice %103 {offsets = [0, 4], sizes = [8, 4], strides = [1, 1]} : vector<8x8xf32> to vector<8x4xf32>
    %113 = vector.shape_cast %111 : vector<8x4xf32> to vector<1x8x4xf32>
    %114 = vector.shape_cast %112 : vector<8x4xf32> to vector<1x8x4xf32>
    %115 = tpu.concatenate %113, %114 in 0 : vector<1x8x4xf32>, vector<1x8x4xf32> -> vector<2x8x4xf32>
    %116 = vector.extract_strided_slice %109 {offsets = [0, 0], sizes = [16, 4], strides = [1, 1]} : vector<16x8xf32> to vector<16x4xf32>
    %117 = vector.extract_strided_slice %109 {offsets = [0, 4], sizes = [16, 4], strides = [1, 1]} : vector<16x8xf32> to vector<16x4xf32>
    %118 = vector.shape_cast %116 : vector<16x4xf32> to vector<1x16x4xf32>
    %119 = vector.shape_cast %117 : vector<16x4xf32> to vector<1x16x4xf32>
    %120 = tpu.concatenate %118, %119 in 0 : vector<1x16x4xf32>, vector<1x16x4xf32> -> vector<2x16x4xf32>
    %121 = vector.extract_strided_slice %110 {offsets = [0, 0], sizes = [16, 4], strides = [1, 1]} : vector<16x8xf32> to vector<16x4xf32>
    %122 = vector.extract_strided_slice %110 {offsets = [0, 4], sizes = [16, 4], strides = [1, 1]} : vector<16x8xf32> to vector<16x4xf32>
    %123 = vector.shape_cast %121 : vector<16x4xf32> to vector<1x16x4xf32>
    %124 = vector.shape_cast %122 : vector<16x4xf32> to vector<1x16x4xf32>
    %125 = tpu.concatenate %123, %124 in 0 : vector<1x16x4xf32>, vector<1x16x4xf32> -> vector<2x16x4xf32>
    "tpu.trace_start"() <{level = 10 : i32, message = "hqd,hkd->hqk"}> : () -> ()
    %cst_26 = arith.constant dense<0.000000e+00> : vector<2x8x16xf32>
    %126 = tpu.matmul %115, %120, %cst_26 {dimension_numbers = #tpu.dot_dimension_numbers<[2], [2], [1], [1], [0, 0, 0, 1, 1, 1], [0], [0]>} : vector<2x8x4xf32>, vector<2x16x4xf32>, vector<2x8x16xf32> -> vector<2x8x16xf32>
    "tpu.trace_stop"() : () -> ()
    %cst_27 = arith.constant dense<0xFF800000> : vector<2x8xf32>
    %127 = vector.multi_reduction <maximumf>, %126, %cst_27 [2] : vector<2x8x16xf32> to vector<2x8xf32>
    %128 = vector.shape_cast %127 : vector<2x8xf32> to vector<2x8x1xf32>
    %129 = vector.broadcast %128 : vector<2x8x1xf32> to vector<2x8x16xf32>
    %130 = arith.subf %126, %129 : vector<2x8x16xf32>
    %131 = math.exp %130 : vector<2x8x16xf32>
    %cst_28 = arith.constant dense<0.000000e+00> : vector<2x8xf32>
    %132 = vector.multi_reduction <add>, %131, %cst_28 [2] : vector<2x8x16xf32> to vector<2x8xf32>
    %133 = vector.shape_cast %132 : vector<2x8xf32> to vector<2x8x1xf32>
    %134 = vector.broadcast %133 : vector<2x8x1xf32> to vector<2x8x16xf32>
    %135 = arith.divf %131, %134 : vector<2x8x16xf32>
    "tpu.trace_start"() <{level = 10 : i32, message = "hqk,hkd->hqd"}> : () -> ()
    %cst_29 = arith.constant dense<0.000000e+00> : vector<2x8x4xf32>
    %136 = tpu.matmul %135, %125, %cst_29 {dimension_numbers = #tpu.dot_dimension_numbers<[2], [1], [1], [2], [0, 0, 0, 1, 1, 2], [0], [0]>} : vector<2x8x16xf32>, vector<2x16x4xf32>, vector<2x8x4xf32> -> vector<2x8x4xf32>
    "tpu.trace_stop"() : () -> ()
    %137 = vector.extract_strided_slice %136 {offsets = [0, 0, 0], sizes = [1, 8, 4], strides = [1, 1, 1]} : vector<2x8x4xf32> to vector<1x8x4xf32>
    %138 = vector.shape_cast %137 : vector<1x8x4xf32> to vector<8x4xf32>
    %139 = vector.extract_strided_slice %136 {offsets = [1, 0, 0], sizes = [1, 8, 4], strides = [1, 1, 1]} : vector<2x8x4xf32> to vector<1x8x4xf32>
    %140 = vector.shape_cast %139 : vector<1x8x4xf32> to vector<8x4xf32>
    %141 = tpu.concatenate %138, %140 in 1 : vector<8x4xf32>, vector<8x4xf32> -> vector<8x8xf32>
    %142 = vector.extract_strided_slice %4 {offsets = [0, 56], sizes = [8, 8], strides = [1, 1]} : vector<8x72xf32> to vector<8x8xf32>
    %cst_30 = arith.constant dense<0.000000e+00> : vector<8x8xf32>
    %143 = tpu.matmul %141, %142, %cst_30 {dimension_numbers = #tpu.dot_dimension_numbers<[1], [0], [0], [1], [0, 0, 1, 1], [], []>} : vector<8x8xf32>, vector<8x8xf32>, vector<8x8xf32> -> vector<8x8xf32>
    %144 = vector.extract_strided_slice %5 {offsets = [0, 104], sizes = [1, 8], strides = [1, 1]} : vector<1x128xf32> to vector<1x8xf32>
    %145 = vector.broadcast %144 : vector<1x8xf32> to vector<8x8xf32>
    %146 = arith.addf %143, %145 : vector<8x8xf32>
    %147 = arith.addf %74, %146 : vector<8x8xf32>
    %148 = vector.extract_strided_slice %5 {offsets = [0, 16], sizes = [1, 8], strides = [1, 1]} : vector<1x128xf32> to vector<1x8xf32>
    %149 = vector.extract_strided_slice %5 {offsets = [0, 40], sizes = [1, 8], strides = [1, 1]} : vector<1x128xf32> to vector<1x8xf32>
    %cst_31 = arith.constant dense<0.000000e+00> : vector<8xf32>
    %150 = vector.multi_reduction <add>, %147, %cst_31 [1] : vector<8x8xf32> to vector<8xf32>
    %151 = vector.shape_cast %150 : vector<8xf32> to vector<8x1xf32>
    %cst_32 = arith.constant 8.000000e+00 : f32
    %152 = vector.broadcast %cst_32 : f32 to vector<8x1xf32>
    %153 = arith.divf %151, %152 : vector<8x1xf32>
    %154 = vector.broadcast %153 : vector<8x1xf32> to vector<8x8xf32>
    %155 = arith.subf %147, %154 : vector<8x8xf32>
    %156 = arith.mulf %155, %155 : vector<8x8xf32>
    %cst_33 = arith.constant dense<0.000000e+00> : vector<8xf32>
    %157 = vector.multi_reduction <add>, %156, %cst_33 [1] : vector<8x8xf32> to vector<8xf32>
    %158 = vector.shape_cast %157 : vector<8xf32> to vector<8x1xf32>
    %cst_34 = arith.constant 8.000000e+00 : f32
    %159 = vector.broadcast %cst_34 : f32 to vector<8x1xf32>
    %160 = arith.divf %158, %159 : vector<8x1xf32>
    %161 = vector.broadcast %153 : vector<8x1xf32> to vector<8x8xf32>
    %162 = arith.subf %147, %161 : vector<8x8xf32>
    %cst_35 = arith.constant 9.99999974E-6 : f32
    %163 = vector.broadcast %cst_35 : f32 to vector<8x1xf32>
    %164 = arith.addf %160, %163 : vector<8x1xf32>
    %165 = math.rsqrt %164 : vector<8x1xf32>
    %166 = vector.broadcast %165 : vector<8x1xf32> to vector<8x8xf32>
    %167 = arith.mulf %162, %166 : vector<8x8xf32>
    %168 = vector.broadcast %148 : vector<1x8xf32> to vector<8x8xf32>
    %169 = arith.mulf %167, %168 : vector<8x8xf32>
    %170 = vector.broadcast %149 : vector<1x8xf32> to vector<8x8xf32>
    %171 = arith.addf %169, %170 : vector<8x8xf32>
    %172 = vector.extract_strided_slice %4 {offsets = [0, 64], sizes = [8, 8], strides = [1, 1]} : vector<8x72xf32> to vector<8x8xf32>
    %cst_36 = arith.constant dense<0.000000e+00> : vector<8x8xf32>
    %173 = tpu.matmul %171, %172, %cst_36 {dimension_numbers = #tpu.dot_dimension_numbers<[1], [0], [0], [1], [0, 0, 1, 1], [], []>} : vector<8x8xf32>, vector<8x8xf32>, vector<8x8xf32> -> vector<8x8xf32>
    %174 = vector.extract_strided_slice %5 {offsets = [0, 112], sizes = [1, 8], strides = [1, 1]} : vector<1x128xf32> to vector<1x8xf32>
    %175 = vector.broadcast %174 : vector<1x8xf32> to vector<8x8xf32>
    %176 = arith.addf %173, %175 : vector<8x8xf32>
    %cst_37 = arith.constant 0.000000e+00 : f32
    %177 = vector.broadcast %cst_37 : f32 to vector<8x8xf32>
    %178 = arith.maximumf %176, %177 : vector<8x8xf32>
    %c0_38 = arith.constant 0 : index
    %c0_39 = arith.constant 0 : index
    %179 = vector.load %arg4[%c0_38, %c0_39] : memref<8x8xf32, #tpu.memory_space<vmem>>, vector<8x8xf32>
    %cst_40 = arith.constant dense<0.000000e+00> : vector<8x8xf32>
    %180 = tpu.matmul %178, %179, %cst_40 {dimension_numbers = #tpu.dot_dimension_numbers<[1], [0], [0], [1], [0, 0, 1, 1], [], []>} : vector<8x8xf32>, vector<8x8xf32>, vector<8x8xf32> -> vector<8x8xf32>
    %181 = vector.extract_strided_slice %5 {offsets = [0, 120], sizes = [1, 8], strides = [1, 1]} : vector<1x128xf32> to vector<1x8xf32>
    %182 = vector.broadcast %181 : vector<1x8xf32> to vector<8x8xf32>
    %183 = arith.addf %180, %182 : vector<8x8xf32>
    %184 = arith.addf %147, %183 : vector<8x8xf32>
    %c0_41 = arith.constant 0 : index
    %c0_42 = arith.constant 0 : index
    %c0_43 = arith.constant 0 : index
    %185 = vector.load %arg6[%c0_41, %c0_42, %c0_43] : memref<1x8x8xf32, #tpu.memory_space<vmem>>, vector<1x8x8xf32>
    %186 = vector.shape_cast %185 : vector<1x8x8xf32> to vector<8x8xf32>
    %187 = vector.shape_cast %184 : vector<8x8xf32> to vector<1x8x8xf32>
    tpu.vector_store %arg6[%c0_41, %c0_42, %c0_43], %187 {strides = array<i32>} : memref<1x8x8xf32, #tpu.memory_space<vmem>>, vector<1x8x8xf32>,
    return
  }
  func.func @transform_0(%arg0: i32) -> (i32, i32, i32) {
    %c0_i32 = arith.constant 0 : i32
    %c0_i32_0 = arith.constant 0 : i32
    %c0_i32_1 = arith.constant 0 : i32
    return %arg0, %c0_i32, %c0_i32_0 : i32, i32, i32
  }
  func.func @transform_1(%arg0: i32) -> (i32, i32, i32) {
    %c0_i32 = arith.constant 0 : i32
    %c0_i32_0 = arith.constant 0 : i32
    %c0_i32_1 = arith.constant 0 : i32
    return %arg0, %c0_i32, %c0_i32_0 : i32, i32, i32
  }
  func.func @transform_2(%arg0: i32) -> (i32, i32) {
    %c0_i32 = arith.constant 0 : i32
    %c0_i32_0 = arith.constant 0 : i32
    %c0_i32_1 = arith.constant 0 : i32
    return %c0_i32, %c0_i32_0 : i32, i32
  }
  func.func @transform_3(%arg0: i32) -> (i32, i32) {
    %c0_i32 = arith.constant 0 : i32
    %c0_i32_0 = arith.constant 0 : i32
    %c0_i32_1 = arith.constant 0 : i32
    return %c0_i32, %c0_i32_0 : i32, i32
  }
  func.func @transform_4(%arg0: i32) -> (i32, i32) {
    %c0_i32 = arith.constant 0 : i32
    %c0_i32_0 = arith.constant 0 : i32
    %c0_i32_1 = arith.constant 0 : i32
    return %c0_i32, %c0_i32_0 : i32, i32
  }
  func.func @transform_5(%arg0: i32) -> (i32, i32, i32) {
    %c0_i32 = arith.constant 0 : i32
    %c0_i32_0 = arith.constant 0 : i32
    %c0_i32_1 = arith.constant 0 : i32
    return %arg0, %c0_i32, %c0_i32_0 : i32, i32, i32
  }
}

</mosaic_0001>

<bundles_post_ra>
// kernel: tpu_custom_call.1
= control target key start
LH: loop header
LB: loop body
LE: loop exit
PB: predicated region body
PF: predicated region fallthrough
CT: control target
= control target key end

     0   :  { %10 = vsyncpa [#allocation3], 0  ;;  %s1415_s0 = inlined_call_operand.vmem [shape: f32[2,8,8], index: 0, kind: input, shape index: {}]   ;;  %s1416_s1 = inlined_call_operand.vmem [shape: f32[2,16,8], index: 1, kind: input, shape index: {}]   ;;  %s1417_s2 = inlined_call_operand.vmem [shape: f32[8,72], index: 2, kind: input, shape index: {}]   ;;  %s1418_s3 = inlined_call_operand.vmem [shape: f32[8,8], index: 3, kind: input, shape index: {}]   ;;  %s1419_s4 = inlined_call_operand.vmem [shape: f32[1,128], index: 4, kind: input, shape index: {}]   ;;  %s1420_s5 = inlined_call_operand.hbm [shape: f32[2,8,8], index: 5, kind: output, shape index: {}]  }
   0x1   :  { %12 = vsyncpa [#allocation3 + $0x1], 0  ;;  %s1211_s18 = smov 0   ;;  %s1213_s19 = smov 0  }
   0x2   :  { %s1215_s20 = smov 0   ;;  %s1217_s21 = smov 0  }
   0x3 LB: > { %s1232_s22 = sadd.s32 4294967295, %s1162_s21   ;;  %s974_s23 = sadd.s32 4294967294, %s1162_s21   ;;  %s1162_s21 = sphi %s1217_s21, %s1426_s21   ;;  %s1158_s20 = sphi %s1215_s20, %s1425_s20   ;;  %s1154_s19 = sphi %s1213_s19, %s1424_s19   ;;  %s1150_s18 = sphi %s1211_s18, %s1423_s18  }
   0x4   : > { %s1236_s24 = sadd.s32 1, %s1162_s21   ;;  %s140_s25 = sadd.s32 1, %s1158_s20 }
   0x5   : > { %s137_s26 = ssub.s32 %s1162_s21, %s1236_s24  ;;  %p150_p0 = scmp.ne.s32.totalorder %s1158_s20, %s1154_s19 }
   0x6   : > { %p138_p1 = scmp.eq.s32.totalorder %s137_s26, 0  ;;  %p151_p2 = scmp.eq.s32.totalorder %s1232_s22, 1 }
   0x7   : > { %p156_p3 = scmp.ne.s32.totalorder %s1154_s19, %s1150_s18  ;;  %p157_p4 = scmp.eq.s32.totalorder %s974_s23, 1 }
   0x8   : > { %s1247_s27 = scalar_select %p138_p1, %s1158_s20, %s140_s25  }
   0x9   : > { %p1249_p5 = por %p151_p2, %p150_p0  ;;  %p1253_p6 = por %p157_p4, %p156_p3 }
   0xa   : > { %p977_p7 = scmp.ge.s32.totalorder %s1162_s21, 1  ;;  %p199_p8 = scmp.lt.s32.totalorder %s1162_s21, 3 }
   0xc   : > { %p200_p9 = pnand %p977_p7, %p199_p8 }
   0xd   : > { %p231_p10 = scmp.lt.s32.totalorder (!%p200_p9), %s1232_s22, 1  ;;  %s1165_s12 = smov (!%p200_p9), 104  }
   0xe   : > { %203 = sbr.rel (%p200_p9) target bundleno = 3201 (0xc81), region = 40  ;;  %s1166_s13 = smov (!%p200_p9), 80  }
   0xf   : > { %s1167_s16 = smov (!%p200_p9), 120   ;;  %s1168_s17 = smov (!%p200_p9), 124  }
  0x10   : > { %s1169_s23 = smov (!%p200_p9), 112   ;;  %s1170_s25 = smov (!%p200_p9), 56  }
  0x11   : > { %s1171_s26 = smov (!%p200_p9), 4   ;;  %s1173_s7 = smov (!%p200_p9), 96  }
  0x12   : > { %s1174_s8 = smov (!%p200_p9), 40   ;;  %s1177_s14 = smov (!%p200_p9), 24  }
  0x13   : > { %s1261_s30 = scalar_select %p231_p10, %s1232_s22, 1  ;;  %vm245_vm0 = vcmask 64512   ;;  %v1164_v2 = vmov 8.0   ;;  %v1274_v3 = vld [vmem:[%s1419_s4] ss:$0 sm:$0xff]  ;;  %vm314_vm5 = vcmask 31744  }
  0x14   : > { %1076 = vrcp.f32 %v1164_v2  ;;  %279 = vrot.lane.b32.xlu1 %v1274_v3, %s1165_s12  ;;  %v1287_v15 = vld [vmem:[%s1417_s2] sm:$0xff]  ;;  %s1178_s15 = smov 64  }
  0x15   : > { %s979_s6 = sshll.u32 %s1261_s30, 3  ;;  %304 = vmatpush.msra.mxu0 %v1287_v15 }
  0x16   : > { %s234_s9 = scalar_lea.vmem %s1415_s0, %s979_s6  ;;  %s1172_s6 = smov 88  }
  0x17   : > { %v1267_v0 = vld [vmem:[%s234_s9] sm:$0xff]  ;;  %s1008_s9 = sshll.u32 %s1261_s30, 4  ;;  %s1175_s30 = smov 48  }
  0x18   : > { %v246_v1 = vsel %vm245_vm0, %v1267_v0, 0.0 }
  0x19   : > { %247 = vadd.xlane.f32.xlu0 %v246_v1 }
  0x1a   : > { %v1077_v4 = vpop.eup %1076 }
  0x1b   : > { %v250_v5 = vmul.f32 8.0, %v1077_v4  ;;  %vm254_vm1 = vweird.f32 %v1077_v4 }
  0x1c   : > { %283 = vrot.lane.b32.xlu1 %v1274_v3, %s1166_s13  ;;  %s1176_s13 = smov 72  }
  0x1d   : > { %v251_v6 = vsub.f32 1.0, %v250_v5 }
  0x1f   : > { %v252_v7 = vmul.f32 %v1077_v4, %v251_v6 }
  0x21   : > { %v253_v8 = vadd.f32 %v1077_v4, %v252_v7 }
  0x23   : > { %v1278_v9 = vsel %vm254_vm1, %v1077_v4, %v253_v8 }
  0x86   : > { %v280_v27 = vpop.permute.xlu1 %279 }
  0x8c   : > { %v248_v10 = vpop.xlane.xlu0 %247 }
  0x8d   : > { %v256_v11 = vmul.f32 %v1278_v9, %v248_v10 }
  0x8e   : > { %v284_v30 = vpop.permute.xlu1 %283 }
  0x8f   : > { %v257_v12 = vsub.f32 %v1267_v0, %v256_v11 }
  0x91   : > { %v258_v13 = vmul.f32 %v257_v12, %v257_v12 }
  0x93   : > { %v259_v14 = vsel %vm245_vm0, %v258_v13, 0.0 }
  0x94   : > { %260 = vadd.xlane.f32.xlu0 %v259_v14 }
 0x107   : > { %v261_v16 = vpop.xlane.xlu0 %260 }
 0x108   : > { %v262_v17 = vmul.f32 %v261_v16, %v1278_v9 }
 0x10a   : > { %v263_v18 = vadd.f32 1e-05, %v262_v17 }
 0x10c   : > { %1078 = vrsqrt.f32 %v263_v18  ;;  %vm270_vm3 = vweird.f32 %v263_v18 }
 0x112   : > { %v1079_v19 = vpop.eup %1078 }
 0x113   : > { %v265_v20 = vmul.f32 %v1079_v19, %v263_v18  ;;  %vm271_vm2 = vweird.f32 %v1079_v19 }
 0x114   : > { %vm272_vm4 = vmor %vm270_vm3, %vm271_vm2  ;;  %vm656_vm2 = vcmask 130048  }
 0x115   : > { %v266_v21 = vmul.f32 %v1079_v19, %v265_v20 }
 0x117   : > { %v267_v22 = vmul.f32 0.5, %v266_v21 }
 0x119   : > { %v268_v23 = vsub.f32 1.5, %v267_v22 }
 0x11b   : > { %v269_v24 = vmul.f32 %v1079_v19, %v268_v23 }
 0x11d   : > { %v273_v25 = vsel %vm272_vm4, %v1079_v19, %v269_v24 }
 0x11e   : > { %v274_v26 = vmul.f32 %v273_v25, %v257_v12 }
 0x120   : > { %v278_v28 = vmul.f32 %v1274_v3, %v274_v26 }
 0x122   : > { %v282_v29 = vadd.f32 %v280_v27, %v278_v28 }
 0x124   : > { %982 = vmatmul.msk.f32.vlgmr.msra.gmra.mxu0 %vm245_vm0, %v282_v29 }
 0x1a1   : > { %v306_v31 = vpop.f32.mrf.mxu0 }
 0x1a2   : > { %v307_v32 = vadd.f32 %v306_v31, %v284_v30 }
 0x1a4   : > { %312 = vrot.lane.b32.xlu0 %v307_v32, %s1167_s16  ;;  %310 = vrot.lane.b32.xlu2 %v307_v32, %s1168_s17 }
 0x1fe   : > { %v311_v33 = vpop.permute.xlu2 %310 }
 0x1ff   : > { %339 = vrot.lane.b32.xlu2 %v311_v33, %s1167_s16 }
 0x216   : > { %v313_v34 = vpop.permute.xlu0 %312 }
 0x217   : > { %983 = vmatpush.xpose.msk.msra.mxu1 %vm314_vm5, %v313_v34 }
 0x21a   : > { %984 = vmatmul.msk.f32.vlgmr.msra.gmra.mxu1 %vm314_vm5, %v307_v32 }
 0x259   : > { %v340_v35 = vpop.permute.xlu2 %339 }
 0x25a   : > { %985 = vmatpush.xpose.msk.msra.mxu2 %vm314_vm5, %v340_v35 }
 0x25d   : > { %986 = vmatmul.msk.f32.vlgmr.msra.gmra.mxu2 %vm314_vm5, %v311_v33 }
 0x297   : > { %v336_v36 = vpop.f32.mrf.mxu1 }
 0x298   : > { %v365_v37 = vsel %vm245_vm0, %v336_v36, -inf }
 0x299   : > { %366 = vmax.xlane.f32.xlu2 %v365_v37 }
 0x2b1   : > { %439 = vrot.lane.b32.xlu2 %v311_v33, %s1169_s23 }
 0x2b9   : > { %471 = vrot.lane.b32.xlu2 %v1287_v15, %s1165_s12  ;;  %s239_s12 = scalar_lea.vmem %s1416_s1, %s1008_s9 }
 0x2ba   : > { %v241_v27 = vld [vmem:[%s239_s12] sm:$0xff] }
 0x2c1   : > { %474 = vrot.lane.b32.xlu2 %v1274_v3, %s1170_s25  ;;  %s1180_s25 = smov 8  }
 0x2e0   : > { %v362_v38 = vpop.f32.mrf.mxu2 }
 0x2e1   : > { %v368_v39 = vsel %vm245_vm0, %v362_v38, -inf }
 0x2e2   : > { %369 = vmax.xlane.f32.xlu1 %v368_v39 }
 0x30c   : > { %v367_v40 = vpop.xlane.xlu2 %366 }
 0x30d   : > { %v371_v41 = vsub.f32 %v336_v36, %v367_v40 }
 0x30f   : > { %v373_v42 = vmul.f32 1.442695, %v371_v41 }
 0x311   : > { %1080 = vpow2.f32 %v373_v42 }
 0x314   : > { %v440_v43 = vpop.permute.xlu2 %439 }
 0x315   : > { %460 = vmatpush.msrb.mxu0 %v440_v43 }
 0x317   : > { %v1081_v44 = vpop.eup %1080 }
 0x318   : > { %v377_v45 = vsel %vm245_vm0, %v1081_v44, 0.0 }
 0x319   : > { %378 = vadd.xlane.f32.xlu1 %v377_v45 }
 0x31c   : > { %v472_v16 = vpop.permute.xlu2 %471 }
 0x324   : > { %v475_v21 = vpop.permute.xlu2 %474 }
 0x332   : > { %413 = vrot.lane.b32.xlu1 %v307_v32, %s1169_s23 }
 0x355   : > { %v370_v46 = vpop.xlane.xlu1 %369 }
 0x356   : > { %v372_v47 = vsub.f32 %v362_v38, %v370_v46 }
 0x358   : > { %v375_v48 = vmul.f32 1.442695, %v372_v47 }
 0x35a   : > { %1082 = vpow2.f32 %v375_v48 }
 0x360   : > { %v1083_v49 = vpop.eup %1082 }
 0x361   : > { %v380_v50 = vsel %vm245_vm0, %v1083_v49, 0.0 }
 0x362   : > { %381 = vadd.xlane.f32.xlu0 %v380_v50 }
 0x38c   : > { %v379_v51 = vpop.xlane.xlu1 %378 }
 0x38d   : > { %1084 = vrcp.f32 %v379_v51  ;;  %v394_v57 = vand.u32 2147483648, %v379_v51  ;;  %vm388_vm7 = vweird.f32 %v379_v51  ;;  %v392_v58 = vand.u32 2147483647, %v379_v51 }
 0x38f   : > { %v395_v60 = vor.u32 1.1754944e-38, %v394_v57  ;;  %vm393_vm9 = vcmp.eq.f32.partialorder %v392_v58, 8.507059e+37 }
 0x393   : > { %v1085_v52 = vpop.eup %1084 }
 0x394   : > { %v384_v53 = vmul.f32 %v1085_v52, %v379_v51  ;;  %vm389_vm6 = vweird.f32 %v1085_v52 }
 0x395   : > { %vm390_vm8 = vmor %vm388_vm7, %vm389_vm6 }
 0x396   : > { %v385_v54 = vsub.f32 1.0, %v384_v53 }
 0x398   : > { %v386_v55 = vmul.f32 %v1085_v52, %v385_v54 }
 0x39a   : > { %v387_v56 = vadd.f32 %v1085_v52, %v386_v55 }
 0x39c   : > { %v391_v59 = vsel %vm390_vm8, %v1085_v52, %v387_v56 }
 0x39d   : > { %v396_v61 = vsel %vm393_vm9, %v395_v60, %v391_v59 }
 0x39e   : > { %v397_v63 = vmul.f32 %v1081_v44, %v396_v61 }
 0x3a4   : > { %v414_v62 = vpop.permute.xlu1 %413 }
 0x3a5   : > { %434 = vmatpush.msra.mxu3 %v414_v62 }
 0x3a6   : > { %987 = vmatmul.msk.f32.vlgmr.msra.gmra.mxu3 %vm245_vm0, %v397_v63 }
 0x3a7   : > { %495 = vmatpush.msrb.mxu3 %v472_v16 }
 0x3d5   : > { %v382_v1 = vpop.xlane.xlu0 %381 }
 0x3d6   : > { %1086 = vrcp.f32 %v382_v1  ;;  %v409_v6 = vand.u32 2147483648, %v382_v1  ;;  %v407_v8 = vand.u32 2147483647, %v382_v1  ;;  %vm403_vm11 = vweird.f32 %v382_v1 }
 0x3d8   : > { %v410_v11 = vor.u32 1.1754944e-38, %v409_v6  ;;  %vm408_vm13 = vcmp.eq.f32.partialorder %v407_v8, 8.507059e+37 }
 0x3dc   : > { %v1087_v2 = vpop.eup %1086 }
 0x3dd   : > { %v399_v4 = vmul.f32 %v1087_v2, %v382_v1  ;;  %vm404_vm10 = vweird.f32 %v1087_v2 }
 0x3de   : > { %vm405_vm12 = vmor %vm403_vm11, %vm404_vm10 }
 0x3df   : > { %v400_v5 = vsub.f32 1.0, %v399_v4 }
 0x3e1   : > { %v401_v7 = vmul.f32 %v1087_v2, %v400_v5 }
 0x3e3   : > { %v402_v10 = vadd.f32 %v1087_v2, %v401_v7 }
 0x3e5   : > { %v406_v12 = vsel %vm405_vm12, %v1087_v2, %v402_v10 }
 0x3e6   : > { %v411_v13 = vsel %vm408_vm13, %v410_v11, %v406_v12 }
 0x3e7   : > { %v412_v14 = vmul.f32 %v1083_v49, %v411_v13 }
 0x3e9   : > { %988 = vmatmul.msk.f32.vlgmr.msrb.gmra.mxu0 %vm245_vm0, %v412_v14 }
 0x429   : > { %v436_v18 = vpop.f32.mrf.mxu3 }
 0x466   : > { %v462_v17 = vpop.f32.mrf.mxu0 }
 0x467   : > { %466 = vrot.lane.b32.xlu0 %v462_v17, %s1171_s26 }
 0x46f   : > { %560 = vrot.lane.b32.xlu0 %v1287_v15, %s1172_s6 }
 0x477   : > { %523 = vrot.lane.b32.xlu0 %v1274_v3, %s1167_s16 }
 0x47f   : > { %527 = vrot.lane.b32.xlu0 %v1274_v3, %s1173_s7 }
 0x487   : > { %531 = vrot.lane.b32.xlu0 %v1287_v15, %s1173_s7  ;;  %s1005_s7 = sshll.u32 %s1232_s22, 3 }
 0x488   : > { %s898_s10 = scalar_lea.hbm %s1420_s5, %s1005_s7 }
 0x48f   : > { %563 = vrot.lane.b32.xlu0 %v1274_v3, %s1174_s8 }
 0x4d9   : > { %v467_v19 = vpop.permute.xlu0 %466 }
 0x4da   : > { %v469_v20 = vsel %vm314_vm5, %v436_v18, %v467_v19 }
 0x4db   : > { %989 = vmatmul.msk.f32.vlgmr.msrb.gmra.mxu3 %vm245_vm0, %v469_v20 }
 0x4e1   : > { %v561_v26 = vpop.permute.xlu0 %560 }
 0x4e2   : > { %587 = vmatpush.msrb.mxu2 %v561_v26 }
 0x4e3   : > { %991 = vmatmul.msk.f32.vlgmr.msrb.gmra.mxu2 %vm245_vm0, %v241_v27 }
 0x4e9   : > { %v524_v33 = vpop.permute.xlu0 %523 }
 0x4f1   : > { %v528_v34 = vpop.permute.xlu0 %527 }
 0x4f9   : > { %v532_v35 = vpop.permute.xlu0 %531 }
 0x4fa   : > { %555 = vmatpush.msrb.mxu1 %v532_v35 }
 0x501   : > { %v564_v40 = vpop.permute.xlu0 %563 }
 0x55e   : > { %v497_v22 = vpop.f32.mrf.mxu3 }
 0x55f   : > { %v498_v23 = vadd.f32 %v497_v22, %v475_v21 }
 0x561   : > { %v1320_v24 = vadd.f32 %v498_v23, %v1267_v0  ;;  %v242_v0 = vld [vmem:[%s239_s12 + $0x8] sm:$0xff] }
 0x562   : > { %992 = vmatmul.msk.f32.gmra.mxu2 %vm245_vm0, %v242_v0 }
 0x563   : > { %v501_v25 = vsel %vm245_vm0, %v1320_v24, 0.0 }
 0x564   : > { %502 = vadd.xlane.f32.xlu1 %v501_v25 }
 0x566   : > { %v589_v36 = vpop.f32.mrf.mxu2 }
 0x567   : > { %v1337_v41 = vadd.f32 %v589_v36, %v564_v40 }
 0x57d   : > { %534 = vrot.lane.b32.xlu1 %v1274_v3, %s1175_s30  ;;  %s902_s30 = sshll.u32 %s898_s10, 4  ;;  %s903_s30 = int_to_ptr.hbm [resolvable:$true] %s902_s30 }
 0x5d7   : > { %v503_v28 = vpop.xlane.xlu1 %502 }
 0x5d8   : > { %v504_v29 = vmul.f32 %v503_v28, %v1278_v9 }
 0x5da   : > { %v505_v30 = vsub.f32 %v1320_v24, %v504_v29 }
 0x5dc   : > { %v506_v31 = vmul.f32 %v505_v30, %v505_v30 }
 0x5de   : > { %v507_v32 = vsel %vm245_vm0, %v506_v31, 0.0 }
 0x5df   : > { %508 = vadd.xlane.f32.xlu2 %v507_v32 }
 0x5e5   : > { %v592_v42 = vpop.f32.mrf.mxu2 }
 0x5e6   : > { %v593_v43 = vadd.f32 %v592_v42, %v564_v40 }
 0x5e8   : > { %602 = vrot.lane.b32.xlu0 %v593_v43, %s1168_s17  ;;  %993 = vmatpush.xpose.msk.msra.mxu0 %vm314_vm5, %v593_v43  ;;  %v1070_v18 = vpack.i.bf16 %v1337_v41, %v593_v43 }
 0x5ec   : > { %994 = vmatpush.xpose.msk.msra.mxu0 %vm314_vm5, %v1337_v41 }
 0x5ef   : > { %v535_v56 = vpop.permute.xlu1 %534 }
 0x5f7   : > { %600 = vrot.lane.b32.xlu2 %v1337_v41, %s1168_s17 }
 0x652   : > { %v509_v37 = vpop.xlane.xlu2 %508 }
 0x653   : > { %v510_v38 = vmul.f32 %v509_v37, %v1278_v9 }
 0x655   : > { %v511_v39 = vadd.f32 1e-05, %v510_v38 }
 0x657   : > { %1088 = vrsqrt.f32 %v511_v39  ;;  %vm518_vm15 = vweird.f32 %v511_v39 }
 0x65a   : > { %v603_v54 = vpop.permute.xlu0 %602  ;;  %v601_v55 = vpop.permute.xlu2 %600 }
 0x65b   : > { %996 = vmatpush.xpose.msk.msra.mxu3 %vm314_vm5, %v603_v54  ;;  %v1065_v7 = vpack.i.bf16 %v601_v55, %v603_v54 }
 0x65d   : > { %v1089_v44 = vpop.eup %1088 }
 0x65e   : > { %v513_v45 = vmul.f32 %v1089_v44, %v511_v39  ;;  %vm519_vm14 = vweird.f32 %v1089_v44 }
 0x65f   : > { %vm520_vm1 = vmor %vm518_vm15, %vm519_vm14  ;;  %997 = vmatpush.xpose.msk.msra.mxu3 %vm314_vm5, %v601_v55 }
 0x660   : > { %v514_v46 = vmul.f32 %v1089_v44, %v513_v45 }
 0x662   : > { %v515_v47 = vmul.f32 0.5, %v514_v46 }
 0x664   : > { %v516_v48 = vsub.f32 1.5, %v515_v47 }
 0x666   : > { %v517_v49 = vmul.f32 %v1089_v44, %v516_v48 }
 0x668   : > { %v521_v50 = vsel %vm520_vm1, %v1089_v44, %v517_v49 }
 0x669   : > { %v522_v51 = vmul.f32 %v521_v50, %v505_v30 }
 0x66b   : > { %v526_v52 = vmul.f32 %v524_v33, %v522_v51 }
 0x66d   : > { %v530_v53 = vadd.f32 %v528_v34, %v526_v52 }
 0x66f   : > { %990 = vmatmul.msk.f32.vlgmr.msrb.gmra.mxu1 %vm245_vm0, %v530_v53 }
 0x6ec   : > { %v557_v57 = vpop.f32.mrf.mxu1 }
 0x6ed   : > { %v558_v58 = vadd.f32 %v557_v57, %v535_v56 }
 0x6ef   : > { %596 = vrot.lane.b32.xlu0 %v558_v58, %s1168_s17  ;;  %995 = vmatmul.msk.f32.vlgmr.msra.gmra.mxu0 %vm314_vm5, %v558_v58  ;;  %s1120_s17 = scalar_lea.hbm %s1420_s5, 16 }
 0x761   : > { %v597_v59 = vpop.permute.xlu0 %596 }
 0x762   : > { %998 = vmatmul.msk.f32.vlgmr.msra.gmra.mxu3 %vm314_vm5, %v597_v59 }
 0x76c   : > { %v627_v60 = vpop.f32.mrf.mxu0 }
 0x76d   : > { %v657_v61 = vsel %vm656_vm2, %v627_v60, -inf }
 0x76e   : > { %658 = vmax.xlane.f32.xlu1 %v657_v61 }
 0x7e1   : > { %v659_v62 = vpop.xlane.xlu1 %658 }
 0x7e2   : > { %v663_v63 = vsub.f32 %v627_v60, %v659_v62 }
 0x7e4   : > { %v665_v1 = vmul.f32 1.442695, %v663_v63 }
 0x7e5   : > { %v653_v2 = vpop.f32.mrf.mxu3 }
 0x7e6   : > { %1090 = vpow2.f32 %v665_v1  ;;  %v660_v4 = vsel %vm656_vm2, %v653_v2, -inf }
 0x7e7   : > { %661 = vmax.xlane.f32.xlu0 %v660_v4 }
 0x7ec   : > { %v1091_v5 = vpop.eup %1090 }
 0x7ed   : > { %v669_v6 = vsel %vm656_vm2, %v1091_v5, 0.0 }
 0x7ee   : > { %670 = vadd.xlane.f32.xlu1 %v669_v6 }
 0x7fb   : > { %1066 = vrot.lane.b32.xlu0 %v1065_v7, %s1167_s16 }
 0x803   : > { %768 = vrot.lane.b32.xlu0 %v1287_v15, %s1176_s13 }
 0x80b   : > { %771 = vrot.lane.b32.xlu0 %v1274_v3, %s1177_s14  ;;  %s1114_s14 = sshra.s32 %s903_s30, 4  ;;  %s1115_s14 = int_to_ptr.hbm [resolvable:$true] %s1114_s14 }
 0x80c   : > { %s1116_s22 = scalar_lea.hbm %s1115_s14, 8  ;;  %p1121_p0 = scmp.lt.s32.totalorder %s1115_s14, %s1420_s5 }
 0x80d   : > { %p1117_p11 = scmp.ne.s32.totalorder %s1115_s14, %s1116_s22  ;;  %p1122_p1 = scmp.lt.s32.totalorder %s1120_s17, %s1116_s22 }
 0x80f   : > { %p1118_p12 = pnand %p1117_p11, %p1249_p5  ;;  %p1123_p2 = por %p1122_p1, %p1121_p0 }
 0x811   : > { %p1119_p13 = pneg %p1118_p12 }
 0x813   : > { %p1124_p3 = pnand %p1123_p2, %p1119_p13 }
 0x85a   : > { %v662_v8 = vpop.xlane.xlu0 %661 }
 0x85b   : > { %v664_v10 = vsub.f32 %v653_v2, %v662_v8 }
 0x85d   : > { %v667_v11 = vmul.f32 1.442695, %v664_v10 }
 0x85f   : > { %1092 = vpow2.f32 %v667_v11 }
 0x861   : > { %v671_v19 = vpop.xlane.xlu1 %670 }
 0x862   : > { %1094 = vrcp.f32 %v671_v19  ;;  %v686_v27 = vand.u32 2147483648, %v671_v19  ;;  %vm680_vm4 = vweird.f32 %v671_v19  ;;  %v684_v0 = vand.u32 2147483647, %v671_v19 }
 0x864   : > { %v687_v30 = vor.u32 1.1754944e-38, %v686_v27  ;;  %vm685_vm7 = vcmp.eq.f32.partialorder %v684_v0, 8.507059e+37 }
 0x865   : > { %v1093_v12 = vpop.eup %1092 }
 0x866   : > { %v672_v13 = vsel %vm656_vm2, %v1093_v12, 0.0 }
 0x867   : > { %673 = vadd.xlane.f32.xlu2 %v672_v13 }
 0x868   : > { %v1095_v20 = vpop.eup %1094 }
 0x869   : > { %v676_v21 = vmul.f32 %v1095_v20, %v671_v19  ;;  %vm681_vm3 = vweird.f32 %v1095_v20 }
 0x86a   : > { %vm682_vm6 = vmor %vm680_vm4, %vm681_vm3 }
 0x86b   : > { %v677_v22 = vsub.f32 1.0, %v676_v21 }
 0x86d   : > { %v1067_v14 = vpop.permute.xlu0 %1066  ;;  %v678_v23 = vmul.f32 %v1095_v20, %v677_v22 }
 0x86e   : > { %v1068_v16 = vunpack.i.l.bf16 %v1067_v14  ;;  %v1069_v17 = vunpack.i.h.bf16 %v1067_v14 }
 0x86f   : > { %v679_v26 = vadd.f32 %v1095_v20, %v678_v23 }
 0x870   : > { %757 = vmatpush.msrb.mxu0 %v1068_v16 }
 0x871   : > { %v683_v28 = vsel %vm682_vm6, %v1095_v20, %v679_v26 }
 0x872   : > { %758 = vmatpush.msrb.mxu0 %v1069_v17  ;;  %v688_v33 = vsel %vm685_vm7, %v687_v30, %v683_v28 }
 0x873   : > { %v689_v40 = vmul.f32 %v1091_v5, %v688_v33 }
 0x875   : > { %v769_v46 = vpop.permute.xlu0 %768 }
 0x876   : > { %792 = vmatpush.msrb.mxu3 %v769_v46 }
 0x87d   : > { %v772_v51 = vpop.permute.xlu0 %771 }
 0x87f   : > { %1071 = vrot.lane.b32.xlu2 %v1070_v18, %s1167_s16  ;;  %s1179_s16 = smov 16  }
 0x8da   : > { %v674_v25 = vpop.xlane.xlu2 %673 }
 0x8db   : > { %1096 = vrcp.f32 %v674_v25  ;;  %v701_v36 = vand.u32 2147483648, %v674_v25  ;;  %v699_v39 = vand.u32 2147483647, %v674_v25  ;;  %vm695_vm9 = vweird.f32 %v674_v25 }
 0x8dd   : > { %v702_v42 = vor.u32 1.1754944e-38, %v701_v36  ;;  %vm700_vm11 = vcmp.eq.f32.partialorder %v699_v39, 8.507059e+37 }
 0x8e1   : > { %v1097_v29 = vpop.eup %1096 }
 0x8e2   : > { %v691_v31 = vmul.f32 %v1097_v29, %v674_v25  ;;  %v1072_v32 = vpop.permute.xlu2 %1071  ;;  %vm696_vm8 = vweird.f32 %v1097_v29 }
 0x8e3   : > { %v1073_v34 = vunpack.i.l.bf16 %v1072_v32  ;;  %v1074_v37 = vunpack.i.h.bf16 %v1072_v32  ;;  %vm697_vm10 = vmor %vm695_vm9, %vm696_vm8 }
 0x8e4   : > { %v692_v35 = vsub.f32 1.0, %v691_v31 }
 0x8e5   : > { %728 = vmatpush.msra.mxu1 %v1073_v34 }
 0x8e6   : > { %v693_v38 = vmul.f32 %v1097_v29, %v692_v35 }
 0x8e7   : > { %729 = vmatpush.msra.mxu1 %v1074_v37 }
 0x8e8   : > { %v694_v41 = vadd.f32 %v1097_v29, %v693_v38  ;;  %999 = vmatmul.msk.f32.vlgmr.msra.gmra.mxu1 %vm656_vm2, %v689_v40 }
 0x8ea   : > { %v698_v43 = vsel %vm697_vm10, %v1097_v29, %v694_v41 }
 0x8eb   : > { %v703_v44 = vsel %vm700_vm11, %v702_v42, %v698_v43 }
 0x8ec   : > { %v704_v45 = vmul.f32 %v1093_v12, %v703_v44 }
 0x8ee   : > { %1000 = vmatmul.msk.f32.vlgmr.msrb.gmra.mxu0 %vm656_vm2, %v704_v45 }
 0x965   : > { %v731_v48 = vpop.f32.mrf.mxu1 }
 0x96b   : > { %v760_v47 = vpop.f32.mrf.mxu0 }
 0x96c   : > { %764 = vrot.lane.b32.xlu1 %v760_v47, %s1171_s26  ;;  %s228_s26 = sand.u32 1, %s1154_s19  }
 0x96d   : > { %s888_s13 = scalar_lea.sflag [#allocation3], %s228_s26 }
 0x974   : > { %820 = vrot.lane.b32.xlu1 %v1274_v3, %s1169_s23 }
 0x97c   : > { %824 = vrot.lane.b32.xlu1 %v1274_v3, %s1172_s6  ;;  %s978_s6 = sshll.u32 %s228_s26, 3 }
 0x97d   : > { %s230_s11 = scalar_lea.vmem [#allocation2], %s978_s6 }
 0x97e   : > { %s900_s12 = sshll.u32 %s230_s11, 4  ;;  %s901_s12 = int_to_ptr.vmem [resolvable:$true] %s900_s12 }
 0x984   : > { %828 = vrot.lane.b32.xlu1 %v1287_v15, %s1178_s15  ;;  %v858_v15 = vld [vmem:[%s1418_s3] sm:$0xff] }
 0x985   : > { %880 = vmatpush.msra.mxu2 %v858_v15 }
 0x98c   : > { %831 = vrot.lane.b32.xlu1 %v1274_v3, %s1179_s16 }
 0x994   : > { %859 = vrot.lane.b32.xlu1 %v1274_v3, %s1180_s25 }
 0x9de   : > { %v765_v49 = vpop.permute.xlu1 %764 }
 0x9df   : > { %v767_v50 = vsel %vm314_vm5, %v731_v48, %v765_v49 }
 0x9e0   : > { %1001 = vmatmul.msk.f32.vlgmr.msrb.gmra.mxu3 %vm245_vm0, %v767_v50 }
 0x9e6   : > { %v821_v61 = vpop.permute.xlu1 %820 }
 0x9ee   : > { %v825_v62 = vpop.permute.xlu1 %824 }
 0x9f6   : > { %v829_v63 = vpop.permute.xlu1 %828 }
 0x9f7   : > { %852 = vmatpush.msrb.mxu1 %v829_v63 }
 0xa63   : > { %v794_v52 = vpop.f32.mrf.mxu3 }
 0xa64   : > { %v795_v53 = vadd.f32 %v794_v52, %v772_v51 }
 0xa66   : > { %v797_v54 = vadd.f32 %v795_v53, %v1320_v24 }
 0xa68   : > { %v798_v55 = vsel %vm245_vm0, %v797_v54, 0.0 }
 0xa69   : > { %799 = vadd.xlane.f32.xlu2 %v798_v55 }
 0xadc   : > { %v800_v56 = vpop.xlane.xlu2 %799 }
 0xadd   : > { %v801_v57 = vmul.f32 %v800_v56, %v1278_v9 }
 0xadf   : > { %v802_v58 = vsub.f32 %v797_v54, %v801_v57 }
 0xae1   : > { %v803_v59 = vmul.f32 %v802_v58, %v802_v58 }
 0xae3   : > { %v804_v60 = vsel %vm245_vm0, %v803_v59, 0.0 }
 0xae4   : > { %805 = vadd.xlane.f32.xlu0 %v804_v60 }
 0xb57   : > { %v806_v24 = vpop.xlane.xlu0 %805 }
 0xb58   : > { %v807_v1 = vmul.f32 %v806_v24, %v1278_v9  ;;  %v832_v9 = vpop.permute.xlu1 %831 }
 0xb5a   : > { %v808_v2 = vadd.f32 1e-05, %v807_v1 }
 0xb5c   : > { %1098 = vrsqrt.f32 %v808_v2  ;;  %vm815_vm12 = vweird.f32 %v808_v2 }
 0xb60   : > { %v860_v19 = vpop.permute.xlu1 %859 }
 0xb62   : > { %v1099_v4 = vpop.eup %1098 }
 0xb63   : > { %v810_v5 = vmul.f32 %v1099_v4, %v808_v2  ;;  %vm816_vm5 = vweird.f32 %v1099_v4 }
 0xb64   : > { %vm817_vm13 = vmor %vm815_vm12, %vm816_vm5 }
 0xb65   : > { %v811_v6 = vmul.f32 %v1099_v4, %v810_v5 }
 0xb67   : > { %v812_v7 = vmul.f32 0.5, %v811_v6 }
 0xb69   : > { %v813_v8 = vsub.f32 1.5, %v812_v7 }
 0xb6b   : > { %v814_v10 = vmul.f32 %v1099_v4, %v813_v8 }
 0xb6d   : > { %v818_v11 = vsel %vm817_vm13, %v1099_v4, %v814_v10 }
 0xb6e   : > { %v819_v12 = vmul.f32 %v818_v11, %v802_v58 }
 0xb70   : > { %v823_v13 = vmul.f32 %v821_v61, %v819_v12 }
 0xb72   : > { %v827_v14 = vadd.f32 %v825_v62, %v823_v13 }
 0xb74   : > { %1002 = vmatmul.msk.f32.vlgmr.msrb.gmra.mxu1 %vm245_vm0, %v827_v14 }
 0xbf1   : > { %v854_v16 = vpop.f32.mrf.mxu1 }
 0xbf2   : > { %v855_v17 = vadd.f32 %v854_v16, %v832_v9 }
 0xbf4   : > { %v857_v18 = vmax.f32 %v855_v17, 0.0 }
 0xbf6   : > { %1003 = vmatmul.msk.f32.vlgmr.msra.gmra.mxu2 %vm245_vm0, %v857_v18 }
 0xc79   : > { %v882_v20 = vpop.f32.mrf.mxu2 }
 0xc7a   : > { %v883_v3 = vadd.f32 %v882_v20, %v860_v19 }
 0xc7c   : > { %v885_v21 = vadd.f32 %v883_v3, %v797_v54 }
 0xc7e   : > { %886 = vst.msk [vmem:[%s230_s11] sm:$0xff] %vm245_vm0, %v885_v21 }
 0xc7f   : > { %1127 = shalt.err (!%p1124_p3)
}
 0xc80   : > { %1009 = dma.vmem_to_hbm [thread:$0]  (%p1249_p5), %s901_s12, 128, %s903_s30, %s888_s13  }
 0xc81 PF: > { %p1015_p4 = scmp.ge.s32.totalorder %s1162_s21, 2  ;;  %s914_s26 = sand.u32 1, %s1150_s18  }
 0xc82   : > { %s915_s6 = scalar_lea.sflag [#allocation3], %s914_s26 }
 0xc83   : > { %p1012_p7 = pnand %p1015_p4, %p1253_p6 }
 0xc85   : > { %p1013_p8 = pneg %p1012_p7 }
 0xc87   : > { %1145 = dma.done.wait (%p1013_p8), %s915_s6, 128  }
 0xc88   : > { %1147 = vsyncadd (%p1013_p8), %s915_s6, 4294967168  ;;  %p15_p9 = scmp.ge.s32.totalorder %s1236_s24, 4   ;;  %s1423_s18 = smov %s1154_s19 }
 0xc89   : > { %s1424_s19 = smov %s1158_s20  ;;  %s1425_s20 = smov %s1247_s27 }
 0xc8a   : > { %s1426_s21 = smov %s1236_s24  ;;  %17 = sbr.rel (!%p15_p9) target bundleno = 3 (0x3), region = 78 }
 0xc8f   :  { %921 = vsyncpa [#allocation3], 1 }
 0xc90   :  { %923 = vsyncpa [#allocation3 + $0x1], 1 }

</bundles_post_ra>
